<compile_context>
chip_gen: v5e
topology: v5e:2x2
jax: 0.10.0
libtpu: 0.0.40
codegen_flags: <defaults>
</compile_context>

<pallas_src>
import jax
import jax.numpy as jnp
from jax.experimental import pallas as pl
from jax.experimental.pallas import tpu as pltpu


TARGET_BLOCK_BYTES = 4 * 1024 * 1024   # ~4 MiB per buffer (per perf review)
_LANE_CHOICES = (512, 256, 128)        # lane-dense last dims (multiples of 128)


def _cdiv(a, b):
    return -(-a // b)


def _round_up(a, b):
    return _cdiv(a, b) * b


def h_swish_kernel(x_ref, o_ref):
    """Elementwise hard-swish on one (block_rows, lanes) tile."""
    x = x_ref[...]
    # Native-dtype compute for f32/bf16 (bf16 VPU on v6e/v7x); upcast otherwise.
    compute_dtype = x.dtype if x.dtype in (jnp.float32, jnp.bfloat16) else jnp.float32
    xc = x.astype(compute_dtype)
    # relu6(x + 3) / 6  ==  clip(x + 3, 0, 6) * (1/6)
    y = xc * (jnp.clip(xc + 3.0, 0.0, 6.0) * (1.0 / 6.0))
    o_ref[...] = y.astype(o_ref.dtype)


def _h_swish_jnp(x):
    """Pure-JAX reference / tiny-tail path: x * relu6(x+3)/6."""
    return x * (jnp.clip(x + 3.0, 0.0, 6.0) * (1.0 / 6.0))


def _h_swish_2d(x2, donate_input=False):
    """Run the Pallas kernel over a lane-dense 2-D slab (rows, lanes)."""
    rows, lanes = x2.shape
    itemsize = jnp.dtype(x2.dtype).itemsize

    # Dtype-aware block sizing: ~TARGET_BLOCK_BYTES per buffer, rows multiple of 8.
    target_rows = max(8, (TARGET_BLOCK_BYTES // (lanes * itemsize)) // 8 * 8)
    # Guarantee >=2 grid steps whenever rows permit so the "parallel" axis can
    # shard across both v7x TensorCores.
    half_rows = max(8, _round_up(_cdiv(rows, 2), 8))
    block_rows = min(target_rows, half_rows)
    grid = (_cdiv(rows, block_rows),)

    block_bytes = block_rows * lanes * itemsize
    # 2 in + 2 out double-buffered blocks + headroom; explicit so v5e's 16 MiB
    # scoped default doesn't reject the larger tiles.
    vmem_limit = max(32 * 1024 * 1024, 5 * block_bytes)

    n = rows * lanes
    cost = pl.CostEstimate(
        flops=5 * n, transcendentals=0, bytes_accessed=2 * n * itemsize
    )

    return pl.pallas_call(
        h_swish_kernel,
        out_shape=jax.ShapeDtypeStruct((rows, lanes), x2.dtype),
        grid=grid,
        in_specs=[pl.BlockSpec((block_rows, lanes), lambda i: (i, 0))],
        out_specs=pl.BlockSpec((block_rows, lanes), lambda i: (i, 0)),
        compiler_params=pltpu.CompilerParams(
            dimension_semantics=("parallel",),
            vmem_limit_bytes=vmem_limit,
        ),
        cost_estimate=cost,
        input_output_aliases={0: 0} if donate_input else {},
    )(x2)


def h_swish(x, donate_input=False):
    """Hard-swish of an arbitrarily shaped tensor, matching the PyTorch module."""
    orig_shape = x.shape
    n = x.size
    if n == 0:                      # degenerate case: nothing to do
        return x
    flat = x.reshape(-1)            # contiguous -> bitcast, no HBM traffic

    # Fast path: pick the widest lane count that divides numel -> zero-copy 2-D view.
    for lanes in _LANE_CHOICES:
        if n % lanes == 0:
            out2 = _h_swish_2d(flat.reshape(n // lanes, lanes), donate_input)
            return out2.reshape(orig_shape)

    # Misaligned fallback: Pallas kernel on the aligned prefix, plain jnp on the
    # < 512-element tail, then stitch.  (Prefix slice / concat still cost one
    # HBM round-trip each; unavoidable without upstream alignment guarantees.)
    n_main = (n // 512) * 512
    if n_main == 0:
        return _h_swish_jnp(x)
    main = _h_swish_2d(flat[:n_main].reshape(n_main // 512, 512))
    tail = _h_swish_jnp(flat[n_main:])
    return jnp.concatenate([main.reshape(-1), tail]).reshape(orig_shape)


if __name__ == "__main__":
    # Small NCHW shape consistent with the module (accepts any tensor).
    B, C, H, W = 2, 4, 16, 16

    key = jax.random.PRNGKey(0)
    # Scale up so values straddle the relu6 knees at -3 and +3.
    x = jax.random.normal(key, (B, C, H, W), dtype=jnp.float32) * 4.0

    out = jax.block_until_ready(h_swish(x))
    ref = _h_swish_jnp(x)
    assert out.shape == (B, C, H, W)
    assert jnp.allclose(out, ref, atol=1e-6, rtol=1e-6), "mismatch vs reference"

    # Also exercise the misaligned path (numel = 1155, not a multiple of 128).
    x_odd = jax.random.normal(jax.random.PRNGKey(0), (3, 5, 7, 11), jnp.float32) * 4.0
    out_odd = jax.block_until_ready(h_swish(x_odd))
    assert jnp.allclose(out_odd, _h_swish_jnp(x_odd), atol=1e-6, rtol=1e-6)

    print("KERNEL_OK")
</pallas_src>

<mosaic_0001>
module attributes {stable_mosaic.version = 11 : i64} {
  func.func @h_swish_kernel(%arg0: i32, %arg1: memref<8x512xf32, #tpu.memory_space<vmem>>, %arg2: memref<8x512xf32, #tpu.memory_space<vmem>>) attributes {dimension_semantics = [#tpu.dimension_semantics<parallel>], iteration_bounds = array<i64: 1>, scalar_prefetch = 0 : i64, scratch_operands = 0 : i64, tpu.core_type = #tpu.core_type<tc>, window_params = [{transform_indices = @transform_0, window_bounds = array<i64: 8, 512>}, {transform_indices = @transform_1, window_bounds = array<i64: 8, 512>}]} {
    %c0 = arith.constant 0 : index
    %c0_0 = arith.constant 0 : index
    %0 = vector.load %arg1[%c0, %c0_0] : memref<8x512xf32, #tpu.memory_space<vmem>>, vector<8x512xf32>
    %cst = arith.constant 3.000000e+00 : f32
    %1 = vector.broadcast %cst : f32 to vector<8x512xf32>
    %2 = arith.addf %0, %1 : vector<8x512xf32>
    %cst_1 = arith.constant 0.000000e+00 : f32
    %cst_2 = arith.constant 6.000000e+00 : f32
    %3 = vector.broadcast %cst_1 : f32 to vector<8x512xf32>
    %4 = arith.maximumf %3, %2 : vector<8x512xf32>
    %5 = vector.broadcast %cst_2 : f32 to vector<8x512xf32>
    %6 = arith.minimumf %5, %4 : vector<8x512xf32>
    %cst_3 = arith.constant 0.166666672 : f32
    %7 = vector.broadcast %cst_3 : f32 to vector<8x512xf32>
    %8 = arith.mulf %6, %7 : vector<8x512xf32>
    %9 = arith.mulf %0, %8 : vector<8x512xf32>
    %c0_4 = arith.constant 0 : index
    %c0_5 = arith.constant 0 : index
    %10 = vector.load %arg2[%c0_4, %c0_5] : memref<8x512xf32, #tpu.memory_space<vmem>>, vector<8x512xf32>
    tpu.vector_store %arg2[%c0_4, %c0_5], %9 {strides = array<i32>} : memref<8x512xf32, #tpu.memory_space<vmem>>, vector<8x512xf32>,
    return
  }
  func.func @transform_0(%arg0: i32) -> (i32, i32) {
    %c0_i32 = arith.constant 0 : i32
    %c0_i32_0 = arith.constant 0 : i32
    return %arg0, %c0_i32 : i32, i32
  }
  func.func @transform_1(%arg0: i32) -> (i32, i32) {
    %c0_i32 = arith.constant 0 : i32
    %c0_i32_0 = arith.constant 0 : i32
    return %arg0, %c0_i32 : i32, i32
  }
}

</mosaic_0001>

<bundles_post_ra>
// kernel: tpu_custom_call.1
= control target key start
LH: loop header
LB: loop body
LE: loop exit
PB: predicated region body
PF: predicated region fallthrough
CT: control target
= control target key end

     0   :  { %6 = vsyncpa [#allocation3], 0  ;;  %s154_s0 = inlined_call_operand.hbm [shape: f32[4,512], index: 0, kind: input, shape index: {}]   ;;  %s155_s1 = inlined_call_operand.hbm [shape: f32[4,512], index: 1, kind: output, shape index: {}]  }
   0x1   :  { %7 = vsyncpa [#allocation4], 0 }
   0x2   :  { %11 = vsyncadd [#allocation3], 256  ;;  %s12_s8 = sshll.u32 %s154_s0, 4  ;;  %s128_s9 = smov [#allocation2]   ;;  %s13_s8 = int_to_ptr.hbm [resolvable:$true] %s12_s8 }
   0x3   :  { %s14_s10 = sshll.u32 %s128_s9, 4  ;;  %s129_s11 = smov 256   ;;  %s15_s10 = int_to_ptr.vmem [resolvable:$true] %s14_s10 }
   0x4   :  { %s130_s12 = smov 16  }
   0x5   :  { %20 = dma.hbm_to_vmem [thread:$0]  %s13_s8, 256, %s15_s10, [#allocation3], %s129_s11, %s129_s11, %s130_s12  }
   0x6   :  { %124 = dma.done.wait [#allocation3], 512  }
   0x7   :  { %125 = vsyncadd [#allocation3], 4294966784  ;;  %v25_v0 = vld [vmem:[#allocation2] sm:$0xff]  ;;  %v26_v1 = vld [vmem:[#allocation2 + $0x8] sm:$0xff] }
   0x8   :  { %v27_v2 = vld [vmem:[#allocation2 + $0x10] sm:$0xff]  ;;  %v29_v3 = vadd.f32 3.0, %v25_v0  ;;  %v30_v4 = vadd.f32 3.0, %v26_v1  ;;  %v28_v6 = vld [vmem:[#allocation2 + $0x18] sm:$0xff] }
   0x9   :  { %v31_v5 = vadd.f32 3.0, %v27_v2  ;;  %v32_v7 = vadd.f32 3.0, %v28_v6 }
   0xa   :  { %v33_v8 = vmax.f32 %v29_v3, 0.0  ;;  %v34_v9 = vmax.f32 %v30_v4, 0.0 }
   0xb   :  { %v35_v10 = vmax.f32 %v31_v5, 0.0  ;;  %v36_v11 = vmax.f32 %v32_v7, 0.0 }
   0xc   :  { %v37_v12 = vmin.f32 %v33_v8, 6.0  ;;  %v38_v13 = vmin.f32 %v34_v9, 6.0 }
   0xd   :  { %v39_v14 = vmin.f32 %v35_v10, 6.0  ;;  %v40_v15 = vmin.f32 %v36_v11, 6.0 }
   0xe   :  { %v41_v16 = vmul.f32 0.16666667, %v37_v12  ;;  %v42_v17 = vmul.f32 0.16666667, %v38_v13 }
   0xf   :  { %v43_v18 = vmul.f32 0.16666667, %v39_v14  ;;  %v44_v19 = vmul.f32 0.16666667, %v40_v15 }
  0x10   :  { %v45_v20 = vmul.f32 %v41_v16, %v25_v0  ;;  %v46_v21 = vmul.f32 %v42_v17, %v26_v1 }
  0x11   :  { %v47_v22 = vmul.f32 %v43_v18, %v27_v2  ;;  %v48_v23 = vmul.f32 %v44_v19, %v28_v6 }
  0x12   :  { %49 = vst [vmem:[#allocation5] sm:$0xff] %v45_v20 }
  0x13   :  { %50 = vst [vmem:[#allocation5 + $0x8] sm:$0xff] %v46_v21 }
  0x14   :  { %51 = vst [vmem:[#allocation5 + $0x10] sm:$0xff] %v47_v22 }
  0x15   :  { %52 = vst [vmem:[#allocation5 + $0x18] sm:$0xff] %v48_v23 }
  0x16   :  { %56 = vsyncadd [#allocation4], 256  ;;  %s59_s14 = sshll.u32 %s155_s1, 4  ;;  %s131_s15 = smov [#allocation5]   ;;  %s60_s14 = int_to_ptr.hbm [resolvable:$true] %s59_s14 }
  0x17   :  { %s57_s16 = sshll.u32 %s131_s15, 4  ;;  %s58_s16 = int_to_ptr.vmem [resolvable:$true] %s57_s16 }
  0x18   :  { %65 = dma.vmem_to_hbm [thread:$0]  %s58_s16, 256, %s60_s14, [#allocation4], %s129_s11, %s129_s11, %s130_s12  }
  0x19   :  { %126 = dma.done.wait [#allocation4], 512  }
  0x1a   :  { %127 = vsyncadd [#allocation4], 4294966784 }
  0x1b   :  { %70 = vsyncpa [#allocation3], 1 }
  0x1c   :  { %71 = vsyncpa [#allocation4], 1 }

</bundles_post_ra>
